<compile_context>
chip_gen: v7x
topology: tpu7x:2x2x1
jax: 0.10.0
libtpu: 0.0.40
codegen_flags: <defaults>
</compile_context>

<pallas_src>
import functools

import jax
import jax.numpy as jnp
from jax.experimental import pallas as pl
from jax.experimental.pallas import tpu as pltpu


# ----------------------------- helpers ---------------------------------------
def _round_up(x, m):
    return (x + m - 1) // m * m


def _pick_batch_tile(batch):
    """Batch rows handled per grid step."""
    if batch >= 16:
        return 8                      # dense sublane use, parallel axis still >= 2
    if batch >= 2:
        return max(1, batch // 2)     # keep >= 2 parallel steps for v7x's 2 TCs
    return 1


def _pick_spatial_chunk(hw, tb, c, itemsize, budget_bytes=8 * 1024 * 1024):
    """Largest 128-multiple chunk whose (tb, C, chunk) block fits the budget."""
    max_chunk = max(128, (budget_bytes // max(1, tb * c * itemsize)) // 128 * 128)
    return min(_round_up(hw, 128), max_chunk)


# ----------------------------- fused kernel ----------------------------------
def _attn_to_1x1_kernel(x_ref, w1_ref, w2_ref, o_ref, acc_ref, *, inv_hw):
    """Grid (n_b, n_chunks).  x_ref: (1, tb, C, chunk); acc_ref: (tb, C) f32."""
    j = pl.program_id(1)

    @pl.when(j == 0)
    def _init():
        acc_ref[...] = jnp.zeros_like(acc_ref)

    # Partial spatial sum for this chunk, accumulated in f32 (exact for bf16 in).
    acc_ref[...] += jnp.sum(x_ref[0].astype(jnp.float32), axis=-1)     # (tb, C)

    @pl.when(j == pl.num_programs(1) - 1)
    def _finalize():
        m = acc_ref[...] * inv_hw                                       # (tb, C)
        h = jnp.dot(m, w1_ref[...].astype(jnp.float32),
                    preferred_element_type=jnp.float32)                 # (tb, 2C)
        y = jnp.dot(h, w2_ref[...].astype(jnp.float32),
                    preferred_element_type=jnp.float32)                 # (tb, C)
        o_ref[...] = y[None].astype(o_ref.dtype)


# ----------------------------- wrapper ----------------------------------------
def attention_to_1x1(x_nchw, w1, w2):
    """x: (B, C, H, W); w1: (C, 2C) = conv1.weight[:,:,0,0].T; w2: (2C, C)."""
    B, C, H, W = x_nchw.shape
    C2 = w1.shape[1]
    HW = H * W
    itemsize = jnp.dtype(x_nchw.dtype).itemsize
    out_dtype = jnp.promote_types(x_nchw.dtype, w1.dtype)

    tb = _pick_batch_tile(B)
    B_pad = _round_up(B, tb)
    n_b = B_pad // tb

    chunk = _pick_spatial_chunk(HW, tb, C, itemsize)
    HW_pad = _round_up(HW, chunk)
    n_chunks = HW_pad // chunk

    x = x_nchw.reshape(B, C, HW)
    if B_pad != B or HW_pad != HW:
        # Zero padding is exact: the mean divides by the true HW; extra batch
        # rows come out as zeros and are sliced off below.
        x = jnp.pad(x, ((0, B_pad - B), (0, 0), (0, HW_pad - HW)))
    x = x.reshape(n_b, tb, C, HW_pad)

    kernel = functools.partial(_attn_to_1x1_kernel, inv_hw=1.0 / float(HW))
    cost = pl.CostEstimate(
        flops=2 * B * C * HW + 2 * B * C * C2 + 2 * B * C2 * C,
        transcendentals=0,
        bytes_accessed=(x.size * itemsize
                        + (w1.size + w2.size) * jnp.dtype(w1.dtype).itemsize
                        + B_pad * C * jnp.dtype(out_dtype).itemsize),
    )

    def run(single_buffer_weights):
        w_kw = {"pipeline_mode": pl.Buffered(1)} if single_buffer_weights else {}
        return pl.pallas_call(
            kernel,
            grid=(n_b, n_chunks),
            in_specs=[
                pl.BlockSpec((1, tb, C, chunk), lambda b, j: (b, 0, 0, j)),
                pl.BlockSpec((C, C2), lambda b, j: (0, 0), **w_kw),
                pl.BlockSpec((C2, C), lambda b, j: (0, 0), **w_kw),
            ],
            out_specs=pl.BlockSpec((1, tb, C), lambda b, j: (b, 0, 0)),
            out_shape=jax.ShapeDtypeStruct((n_b, tb, C), out_dtype),
            scratch_shapes=[pltpu.VMEM((tb, C), jnp.float32)],
            compiler_params=pltpu.CompilerParams(
                dimension_semantics=("parallel", "arbitrary"),
                vmem_limit_bytes=48 * 1024 * 1024,
            ),
            cost_estimate=cost,
        )(x, w1, w2)

    try:
        y = run(True)        # single-buffer the constant-index weight blocks
    except Exception:        # fall back if Buffered(1) unsupported by this Pallas
        y = run(False)

    return y.reshape(B_pad, C)[:B].reshape(B, C, 1, 1)


# ----------------------------- pure-JAX reference -----------------------------
def _reference(x_nchw, w1, w2):
    m = jnp.mean(x_nchw.astype(jnp.float32), axis=(2, 3))              # (B, C)
    y = m @ w1.astype(jnp.float32) @ w2.astype(jnp.float32)            # (B, C)
    return y.reshape(x_nchw.shape[0], x_nchw.shape[1], 1, 1)


# ----------------------------- main -------------------------------------------
if __name__ == "__main__":
    key = jax.random.PRNGKey(0)
    kx, k1, k2, kx2 = jax.random.split(key, 4)

    # --- case 1: nominal small shape (channels = 16) --------------------------
    B, C, H, W = 2, 16, 16, 16
    x = jax.random.normal(kx, (B, C, H, W), dtype=jnp.float32)
    w1 = jax.random.normal(k1, (C, 2 * C), dtype=jnp.float32) * 0.05
    w2 = jax.random.normal(k2, (2 * C, C), dtype=jnp.float32) * 0.05

    out = jax.block_until_ready(attention_to_1x1(x, w1, w2))
    ref = _reference(x, w1, w2)
    assert out.shape == (B, C, 1, 1)
    assert bool(jnp.all(jnp.isfinite(out)))
    assert jnp.allclose(out, ref, atol=1e-5, rtol=1e-5), \
        f"max abs err {float(jnp.max(jnp.abs(out - ref)))}"

    # --- case 2: odd spatial size + odd batch (exercises zero padding) --------
    Bb, Cb, Hb, Wb = 3, 8, 10, 10
    xb = jax.random.normal(kx2, (Bb, Cb, Hb, Wb), dtype=jnp.float32)
    w1b = jax.random.normal(k1, (Cb, 2 * Cb), dtype=jnp.float32) * 0.05
    w2b = jax.random.normal(k2, (2 * Cb, Cb), dtype=jnp.float32) * 0.05

    outb = jax.block_until_ready(attention_to_1x1(xb, w1b, w2b))
    refb = _reference(xb, w1b, w2b)
    assert outb.shape == (Bb, Cb, 1, 1)
    assert jnp.allclose(outb, refb, atol=1e-5, rtol=1e-5), \
        f"max abs err {float(jnp.max(jnp.abs(outb - refb)))}"

    print("KERNEL_OK")
</pallas_src>

<mosaic_0001>
module attributes {stable_mosaic.version = 11 : i64} {
  func.func @_attn_to_1x1_kernel(%arg0: i32, %arg1: i32, %arg2: memref<1x1x16x256xf32, #tpu.memory_space<vmem>>, %arg3: memref<16x32xf32, #tpu.memory_space<vmem>>, %arg4: memref<32x16xf32, #tpu.memory_space<vmem>>, %arg5: memref<1x1x16xf32, #tpu.memory_space<vmem>>, %arg6: memref<1x16xf32, #tpu.memory_space<vmem>>) attributes {dimension_semantics = [#tpu.dimension_semantics<parallel>, #tpu.dimension_semantics<arbitrary>], iteration_bounds = array<i64: 2, 1>, scalar_prefetch = 0 : i64, scratch_operands = 1 : i64, tpu.core_type = #tpu.core_type<tc>, window_params = [{transform_indices = @transform_0, window_bounds = array<i64: 1, 1, 16, 256>}, {pipeline_mode = #tpu.pipeline_mode<synchronous>, transform_indices = @transform_1, window_bounds = array<i64: 16, 32>}, {pipeline_mode = #tpu.pipeline_mode<synchronous>, transform_indices = @transform_2, window_bounds = array<i64: 32, 16>}, {transform_indices = @transform_3, window_bounds = array<i64: 1, 1, 16>}]} {
    %c0_i32 = arith.constant 0 : i32
    %0 = arith.cmpi eq, %arg1, %c0_i32 : i32
    %1 = arith.extui %0 : i1 to i32
    %c0_i32_0 = arith.constant 0 : i32
    %2 = arith.cmpi ne, %1, %c0_i32_0 : i32
    scf.if %2 {
      %cst_10 = arith.constant 0.000000e+00 : f32
      %12 = vector.broadcast %cst_10 : f32 to vector<1x16xf32>
      %c0_11 = arith.constant 0 : index
      %c0_12 = arith.constant 0 : index
      %13 = vector.load %arg6[%c0_11, %c0_12] : memref<1x16xf32, #tpu.memory_space<vmem>>, vector<1x16xf32>
      tpu.vector_store %arg6[%c0_11, %c0_12], %12 {strides = array<i32>} : memref<1x16xf32, #tpu.memory_space<vmem>>, vector<1x16xf32>,
    } else {
    }
    %c0 = arith.constant 0 : index
    %c0_1 = arith.constant 0 : index
    %3 = vector.load %arg6[%c0, %c0_1] : memref<1x16xf32, #tpu.memory_space<vmem>>, vector<1x16xf32>
    %c0_2 = arith.constant 0 : index
    %c0_3 = arith.constant 0 : index
    %c0_4 = arith.constant 0 : index
    %c0_5 = arith.constant 0 : index
    %4 = vector.load %arg2[%c0_2, %c0_3, %c0_4, %c0_5] : memref<1x1x16x256xf32, #tpu.memory_space<vmem>>, vector<1x1x16x256xf32>
    %5 = vector.shape_cast %4 : vector<1x1x16x256xf32> to vector<1x16x256xf32>
    %cst = arith.constant dense<0.000000e+00> : vector<1x16xf32>
    %6 = vector.multi_reduction <add>, %5, %cst [2] : vector<1x16x256xf32> to vector<1x16xf32>
    %7 = arith.addf %3, %6 : vector<1x16xf32>
    %c0_6 = arith.constant 0 : index
    %c0_7 = arith.constant 0 : index
    %8 = vector.load %arg6[%c0_6, %c0_7] : memref<1x16xf32, #tpu.memory_space<vmem>>, vector<1x16xf32>
    tpu.vector_store %arg6[%c0_6, %c0_7], %7 {strides = array<i32>} : memref<1x16xf32, #tpu.memory_space<vmem>>, vector<1x16xf32>,
    %c0_i32_8 = arith.constant 0 : i32
    %9 = arith.cmpi eq, %arg1, %c0_i32_8 : i32
    %10 = arith.extui %9 : i1 to i32
    %c0_i32_9 = arith.constant 0 : i32
    %11 = arith.cmpi ne, %10, %c0_i32_9 : i32
    scf.if %11 {
      %c0_10 = arith.constant 0 : index
      %c0_11 = arith.constant 0 : index
      %12 = vector.load %arg6[%c0_10, %c0_11] : memref<1x16xf32, #tpu.memory_space<vmem>>, vector<1x16xf32>
      %cst_12 = arith.constant 3.906250e-03 : f32
      %13 = vector.broadcast %cst_12 : f32 to vector<1x16xf32>
      %14 = arith.mulf %12, %13 : vector<1x16xf32>
      %c0_13 = arith.constant 0 : index
      %c0_14 = arith.constant 0 : index
      %15 = vector.load %arg3[%c0_13, %c0_14] : memref<16x32xf32, #tpu.memory_space<vmem>>, vector<16x32xf32>
      %cst_15 = arith.constant dense<0.000000e+00> : vector<1x32xf32>
      %16 = tpu.matmul %14, %15, %cst_15 {dimension_numbers = #tpu.dot_dimension_numbers<[1], [0], [0], [1], [0, 0, 1, 1], [], []>} : vector<1x16xf32>, vector<16x32xf32>, vector<1x32xf32> -> vector<1x32xf32>
      %c0_16 = arith.constant 0 : index
      %c0_17 = arith.constant 0 : index
      %17 = vector.load %arg4[%c0_16, %c0_17] : memref<32x16xf32, #tpu.memory_space<vmem>>, vector<32x16xf32>
      %cst_18 = arith.constant dense<0.000000e+00> : vector<1x16xf32>
      %18 = tpu.matmul %16, %17, %cst_18 {dimension_numbers = #tpu.dot_dimension_numbers<[1], [0], [0], [1], [0, 0, 1, 1], [], []>} : vector<1x32xf32>, vector<32x16xf32>, vector<1x16xf32> -> vector<1x16xf32>
      %19 = vector.shape_cast %18 : vector<1x16xf32> to vector<1x1x16xf32>
      %c0_19 = arith.constant 0 : index
      %c0_20 = arith.constant 0 : index
      %c0_21 = arith.constant 0 : index
      %20 = vector.load %arg5[%c0_19, %c0_20, %c0_21] : memref<1x1x16xf32, #tpu.memory_space<vmem>>, vector<1x1x16xf32>
      tpu.vector_store %arg5[%c0_19, %c0_20, %c0_21], %19 {strides = array<i32>} : memref<1x1x16xf32, #tpu.memory_space<vmem>>, vector<1x1x16xf32>,
    } else {
    }
    return
  }
  func.func @transform_0(%arg0: i32, %arg1: i32) -> (i32, i32, i32, i32) {
    %c0_i32 = arith.constant 0 : i32
    %c0_i32_0 = arith.constant 0 : i32
    %c0_i32_1 = arith.constant 0 : i32
    return %arg0, %c0_i32, %c0_i32_0, %arg1 : i32, i32, i32, i32
  }
  func.func @transform_1(%arg0: i32, %arg1: i32) -> (i32, i32) {
    %c0_i32 = arith.constant 0 : i32
    %c0_i32_0 = arith.constant 0 : i32
    %c0_i32_1 = arith.constant 0 : i32
    return %c0_i32, %c0_i32_0 : i32, i32
  }
  func.func @transform_2(%arg0: i32, %arg1: i32) -> (i32, i32) {
    %c0_i32 = arith.constant 0 : i32
    %c0_i32_0 = arith.constant 0 : i32
    %c0_i32_1 = arith.constant 0 : i32
    return %c0_i32, %c0_i32_0 : i32, i32
  }
  func.func @transform_3(%arg0: i32, %arg1: i32) -> (i32, i32, i32) {
    %c0_i32 = arith.constant 0 : i32
    %c0_i32_0 = arith.constant 0 : i32
    %c0_i32_1 = arith.constant 0 : i32
    return %arg0, %c0_i32, %c0_i32_0 : i32, i32, i32
  }
}

module attributes {stable_mosaic.version = 11 : i64} {
  func.func @_attn_to_1x1_kernel(%arg0: i32, %arg1: i32, %arg2: memref<1x1x16x256xf32, #tpu.memory_space<vmem>>, %arg3: memref<16x32xf32, #tpu.memory_space<vmem>>, %arg4: memref<32x16xf32, #tpu.memory_space<vmem>>, %arg5: memref<1x1x16xf32, #tpu.memory_space<vmem>>, %arg6: memref<1x16xf32, #tpu.memory_space<vmem>>) attributes {dimension_semantics = [#tpu.dimension_semantics<parallel>, #tpu.dimension_semantics<arbitrary>], iteration_bounds = array<i64: 2, 1>, scalar_prefetch = 0 : i64, scratch_operands = 1 : i64, tpu.core_type = #tpu.core_type<tc>, window_params = [{transform_indices = @transform_0, window_bounds = array<i64: 1, 1, 16, 256>}, {pipeline_mode = #tpu.pipeline_mode<synchronous>, transform_indices = @transform_1, window_bounds = array<i64: 16, 32>}, {pipeline_mode = #tpu.pipeline_mode<synchronous>, transform_indices = @transform_2, window_bounds = array<i64: 32, 16>}, {transform_indices = @transform_3, window_bounds = array<i64: 1, 1, 16>}]} {
    %c0_i32 = arith.constant 0 : i32
    %0 = arith.cmpi eq, %arg1, %c0_i32 : i32
    %1 = arith.extui %0 : i1 to i32
    %c0_i32_0 = arith.constant 0 : i32
    %2 = arith.cmpi ne, %1, %c0_i32_0 : i32
    scf.if %2 {
      %cst_10 = arith.constant 0.000000e+00 : f32
      %12 = vector.broadcast %cst_10 : f32 to vector<1x16xf32>
      %c0_11 = arith.constant 0 : index
      %c0_12 = arith.constant 0 : index
      %13 = vector.load %arg6[%c0_11, %c0_12] : memref<1x16xf32, #tpu.memory_space<vmem>>, vector<1x16xf32>
      tpu.vector_store %arg6[%c0_11, %c0_12], %12 {strides = array<i32>} : memref<1x16xf32, #tpu.memory_space<vmem>>, vector<1x16xf32>,
    } else {
    }
    %c0 = arith.constant 0 : index
    %c0_1 = arith.constant 0 : index
    %3 = vector.load %arg6[%c0, %c0_1] : memref<1x16xf32, #tpu.memory_space<vmem>>, vector<1x16xf32>
    %c0_2 = arith.constant 0 : index
    %c0_3 = arith.constant 0 : index
    %c0_4 = arith.constant 0 : index
    %c0_5 = arith.constant 0 : index
    %4 = vector.load %arg2[%c0_2, %c0_3, %c0_4, %c0_5] : memref<1x1x16x256xf32, #tpu.memory_space<vmem>>, vector<1x1x16x256xf32>
    %5 = vector.shape_cast %4 : vector<1x1x16x256xf32> to vector<1x16x256xf32>
    %cst = arith.constant dense<0.000000e+00> : vector<1x16xf32>
    %6 = vector.multi_reduction <add>, %5, %cst [2] : vector<1x16x256xf32> to vector<1x16xf32>
    %7 = arith.addf %3, %6 : vector<1x16xf32>
    %c0_6 = arith.constant 0 : index
    %c0_7 = arith.constant 0 : index
    %8 = vector.load %arg6[%c0_6, %c0_7] : memref<1x16xf32, #tpu.memory_space<vmem>>, vector<1x16xf32>
    tpu.vector_store %arg6[%c0_6, %c0_7], %7 {strides = array<i32>} : memref<1x16xf32, #tpu.memory_space<vmem>>, vector<1x16xf32>,
    %c0_i32_8 = arith.constant 0 : i32
    %9 = arith.cmpi eq, %arg1, %c0_i32_8 : i32
    %10 = arith.extui %9 : i1 to i32
    %c0_i32_9 = arith.constant 0 : i32
    %11 = arith.cmpi ne, %10, %c0_i32_9 : i32
    scf.if %11 {
      %c0_10 = arith.constant 0 : index
      %c0_11 = arith.constant 0 : index
      %12 = vector.load %arg6[%c0_10, %c0_11] : memref<1x16xf32, #tpu.memory_space<vmem>>, vector<1x16xf32>
      %cst_12 = arith.constant 3.906250e-03 : f32
      %13 = vector.broadcast %cst_12 : f32 to vector<1x16xf32>
      %14 = arith.mulf %12, %13 : vector<1x16xf32>
      %c0_13 = arith.constant 0 : index
      %c0_14 = arith.constant 0 : index
      %15 = vector.load %arg3[%c0_13, %c0_14] : memref<16x32xf32, #tpu.memory_space<vmem>>, vector<16x32xf32>
      %cst_15 = arith.constant dense<0.000000e+00> : vector<1x32xf32>
      %16 = tpu.matmul %14, %15, %cst_15 {dimension_numbers = #tpu.dot_dimension_numbers<[1], [0], [0], [1], [0, 0, 1, 1], [], []>} : vector<1x16xf32>, vector<16x32xf32>, vector<1x32xf32> -> vector<1x32xf32>
      %c0_16 = arith.constant 0 : index
      %c0_17 = arith.constant 0 : index
      %17 = vector.load %arg4[%c0_16, %c0_17] : memref<32x16xf32, #tpu.memory_space<vmem>>, vector<32x16xf32>
      %cst_18 = arith.constant dense<0.000000e+00> : vector<1x16xf32>
      %18 = tpu.matmul %16, %17, %cst_18 {dimension_numbers = #tpu.dot_dimension_numbers<[1], [0], [0], [1], [0, 0, 1, 1], [], []>} : vector<1x32xf32>, vector<32x16xf32>, vector<1x16xf32> -> vector<1x16xf32>
      %19 = vector.shape_cast %18 : vector<1x16xf32> to vector<1x1x16xf32>
      %c0_19 = arith.constant 0 : index
      %c0_20 = arith.constant 0 : index
      %c0_21 = arith.constant 0 : index
      %20 = vector.load %arg5[%c0_19, %c0_20, %c0_21] : memref<1x1x16xf32, #tpu.memory_space<vmem>>, vector<1x1x16xf32>
      tpu.vector_store %arg5[%c0_19, %c0_20, %c0_21], %19 {strides = array<i32>} : memref<1x1x16xf32, #tpu.memory_space<vmem>>, vector<1x1x16xf32>,
    } else {
    }
    return
  }
  func.func @transform_0(%arg0: i32, %arg1: i32) -> (i32, i32, i32, i32) {
    %c0_i32 = arith.constant 0 : i32
    %c0_i32_0 = arith.constant 0 : i32
    %c0_i32_1 = arith.constant 0 : i32
    return %arg0, %c0_i32, %c0_i32_0, %arg1 : i32, i32, i32, i32
  }
  func.func @transform_1(%arg0: i32, %arg1: i32) -> (i32, i32) {
    %c0_i32 = arith.constant 0 : i32
    %c0_i32_0 = arith.constant 0 : i32
    %c0_i32_1 = arith.constant 0 : i32
    return %c0_i32, %c0_i32_0 : i32, i32
  }
  func.func @transform_2(%arg0: i32, %arg1: i32) -> (i32, i32) {
    %c0_i32 = arith.constant 0 : i32
    %c0_i32_0 = arith.constant 0 : i32
    %c0_i32_1 = arith.constant 0 : i32
    return %c0_i32, %c0_i32_0 : i32, i32
  }
  func.func @transform_3(%arg0: i32, %arg1: i32) -> (i32, i32, i32) {
    %c0_i32 = arith.constant 0 : i32
    %c0_i32_0 = arith.constant 0 : i32
    %c0_i32_1 = arith.constant 0 : i32
    return %arg0, %c0_i32, %c0_i32_0 : i32, i32, i32
  }
}

</mosaic_0001>

<bundles_post_ra>
// kernel: tpu_custom_call.1
= control target key start
LH: loop header
LB: loop body
LE: loop exit
PB: predicated region body
PF: predicated region fallthrough
CT: control target
= control target key end

     0   :  { %8 = vsyncpa [#allocation4], 0  ;;  %s1163_s0 = inlined_call_operand.hbm [shape: f32[2,1,16,256], index: 0, kind: input, shape index: {}]   ;;  %s1164_s1 = inlined_call_operand.vmem [shape: f32[16,32], index: 1, kind: input, shape index: {}]   ;;  %s1165_s2 = inlined_call_operand.vmem [shape: f32[32,16], index: 2, kind: input, shape index: {}]   ;;  %s1166_s3 = inlined_call_operand.hbm [shape: f32[2,1,16], index: 3, kind: output, shape index: {}]  }
   0x1   :  { %10 = vsyncpa [#allocation4 + $0x1], 0 }
   0x2   :  { %11 = vsyncpa [#allocation5], 0 }
   0x3   :  { %13 = vsyncpa [#allocation5 + $0x1], 0  ;;  %s937_s12 = smov 0   ;;  %s939_s13 = smov 0  }
   0x4   :  { %s941_s14 = smov 0   ;;  %s943_s15 = smov 0  }
   0x5   :  { %s945_s16 = smov 0   ;;  %s947_s17 = smov 0  }
   0x6 LB: > { %s673_s18 = sadd.s32 4294967295, %s906_s17   ;;  %s674_s19 = sadd.s32 4294967294, %s906_s17   ;;  %s906_s17 = sphi %s947_s17, %s19_s17   ;;  %s902_s16 = sphi %s945_s16, %s1181_s16   ;;  %s898_s15 = sphi %s943_s15, %s1180_s15   ;;  %s894_s14 = sphi %s941_s14, %s1179_s14   ;;  %s890_s13 = sphi %s939_s13, %s1178_s13   ;;  %s886_s12 = sphi %s937_s12, %s1177_s12  }
   0x7   : > { %s31_s20 = sadd.s32 1, %s902_s16  ;;  %s40_s21 = sadd.s32 1, %s894_s14 }
   0x8   : > { %p33_p0 = scmp.ge.s32.totalorder %s31_s20, 2  ;;  %p47_p1 = scmp.ne.s32.totalorder %s894_s14, %s890_s13 }
   0x9   : > { %p48_p2 = scmp.eq.s32.totalorder %s906_s17, 0  ;;  %p53_p3 = scmp.ne.s32.totalorder %s890_s13, %s886_s12 }
   0xa   : > { %s1183_s20 = smov (%p33_p0, %s31_s20), 0  ;;  %p54_p5 = scmp.eq.s32.totalorder %s673_s18, 0 }
   0xb   : > { %p978_p4 = por %p48_p2, %p47_p1  ;;  %s35_s23 = ssub.s32 %s902_s16, %s1183_s20 }
   0xc   : > { %p119_p6 = scmp.eq.s32.totalorder %s673_s18, 1  ;;  %p38_p7 = scmp.eq.s32.totalorder %s35_s23, 0 }
   0xd   : > { %p984_p8 = por %p54_p5, %p53_p3  ;;  %p125_p10 = scmp.eq.s32.totalorder %s674_s19, 1 }
   0xe   : > { %p988_p9 = por %p119_p6, %p47_p1  ;;  %p735_p13 = scmp.lt.s32.totalorder %s906_s17, 2 }
   0xf   : > { %s993_s26 = scalar_select %p38_p7, %s894_s14, %s40_s21  }
  0x10   : > { %s1170_s25 = scalar_select %p988_p9, 1, 0 }
  0x11   : > { %p995_p11 = por %p125_p10, %p53_p3  ;;  %s151_s28 = sand.u32 1, %s894_s14  }
  0x12   : > { %s677_s29 = sshll.u32 %s151_s28, 5  ;;  %s687_s30 = sshll.u32 %s902_s16, 9 }
  0x13   : > { %s1171_s27 = scalar_select %p995_p11, 1, 0 }
  0x14   : > { %s1006_s6 = scalar_lea.hbm %s1163_s0, %s687_s30  ;;  %s155_s7 = scalar_lea.vmem [#allocation3], %s677_s29 }
  0x15   : > { %s164_s8 = sshll.u32 %s155_s7, 4  ;;  %p1012_p0 = pnand %p735_p13, %p978_p4  ;;  %s1008_s8 = int_to_ptr.vmem [resolvable:$true] %s164_s8 }
  0x16   : > { %s1017_s10 = scalar_lea.sflag [#allocation4], %s151_s28  ;;  %s794_s11 = scalar_lea.hbm %s1006_s6, 512 }
  0x17   : > { %p795_p2 = scmp.ne.s32.totalorder %s1006_s6, %s794_s11  ;;  %p796_p3 = pneg %p1012_p0 }
  0x18   : > { %s799_s21 = scalar_lea.hbm %s1163_s0, 1024  ;;  %p800_p4 = scmp.lt.u32.totalorder %s1006_s6, %s1163_s0 }
  0x19   : > { %p797_p5 = pnand %p796_p3, %p795_p2  ;;  %p801_p7 = scmp.lt.u32.totalorder %s799_s21, %s794_s11 }
  0x1a   : > { %p803_p13 = scmp.lt.u32.totalorder %s794_s11, %s1006_s6 }
  0x1b   : > { %p798_p6 = pneg %p797_p5  ;;  %p802_p10 = por %p801_p7, %p800_p4 }
  0x1d   : > { %p804_p12 = por %p803_p13, %p802_p10 }
  0x1f   : > { %p805_p1 = pnand %p804_p12, %p798_p6 }
  0x21   : > { %808 = shalt.err (!%p805_p1)
}
  0x22   : > { %s809_s28 = scalar_lea.vmem %s1008_s8, 512  ;;  %s908_s29 = smov [#allocation3]  }
  0x23   : > { %p810_p2 = scmp.ne.s32.totalorder %s1008_s8, %s809_s28  ;;  %s814_s30 = sshll.u32 %s908_s29, 4  ;;  %s815_s30 = int_to_ptr.vmem [resolvable:$false] %s814_s30 }
  0x24   : > { %s816_s4 = scalar_lea.vmem %s815_s30, 1024  ;;  %p817_p9 = scmp.lt.s32.totalorder %s1008_s8, %s815_s30 }
  0x25   : > { %p812_p5 = pnand %p810_p2, %p796_p3  ;;  %p818_p4 = scmp.lt.s32.totalorder %s816_s4, %s809_s28 }
  0x27   : > { %p813_p11 = pneg %p812_p5  ;;  %p819_p7 = por %p818_p4, %p817_p9 }
  0x29   : > { %p820_p10 = pnand %p819_p7, %p813_p11 }
  0x2b   : > { %823 = shalt.err (!%p820_p10)
}
  0x2c   : > { %s909_s5 = smov 256   ;;  %s910_s7 = smov 16  }
  0x2d   : > { %730 = dma.hbm_to_vmem [thread:$0]  (!%p1012_p0), %s1006_s6, 512, %s1008_s8, %s1017_s10, %s909_s5, %s909_s5, %s910_s7  }
  0x2e   : > { %p172_p12 = scmp.lt.s32.totalorder %s906_s17, 3  ;;  %p1173_p1 = scmp.ge.s32.totalorder %s906_s17, 1 }
  0x30   : > { %p173_p3 = pnand %p1173_p1, %p172_p12 }
  0x31   : > { %s1049_s11 = sand.u32 (!%p173_p3), 1, %s890_s13  }
  0x32   : > { %176 = sbr.rel (%p173_p3) target bundleno = 807 (0x327), region = 32  ;;  %s681_s18 = sshll.u32 (!%p173_p3), %s1049_s11, 5 }
  0x33   : > { %s179_s19 = scalar_lea.sflag (!%p173_p3), [#allocation4], %s1049_s11  ;;  %s182_s21 = scalar_lea.vmem (!%p173_p3), [#allocation3], %s681_s18 }
  0x39   : > { %877 = dma.done.wait (%p984_p8), %s179_s19, 512  }
  0x3a   : > { %879 = vsyncadd (%p984_p8), %s179_s19, 4294966784  ;;  %v212_v0 = vld [vmem:[%s182_s21] sm:$0xff]  ;;  %v213_v1 = vld [vmem:[%s182_s21 + $0x8] sm:$0xff]  ;;  %v911_v6 = vmov 0   ;;  %v224_v7 = vlaneseq  ;;  %v912_v8 = vmov 1966171168  }
  0x3b   : > { %v214_v2 = vld [vmem:[%s182_s21 + $0x10] sm:$0xff]  ;;  %v216_v3 = vadd.f32 %v213_v1, %v212_v0  ;;  %v215_v4 = vld [vmem:[%s182_s21 + $0x18] sm:$0xff]  ;;  %792 = vset.pattern.permute.xlu1 %v911_v6  ;;  %793 = vset.pattern.permute.xlu0 %v911_v6  ;;  %v293_v9 = vunpack.c.l.s4 %v912_v8  ;;  %vm209_vm0 = vcmask 122880   ;;  %v913_v1 = vmov 0.0   ;;  %v505_v8 = vld [vmem:[%s1165_s2 + $0x8] sm:$0xff]  ;;  %s684_s7 = sshll.u32 %s898_s15, 4 }
  0x3c   : > { %v219_v5 = vadd.f32 %v215_v4, %v214_v2  ;;  %v1058_v10 = vshrl.u32 %v224_v7, 7  ;;  %210 = vst.msk [vmem:[#allocation2] sm:$0x1] %vm209_vm0, %v913_v1  ;;  %v428_v2 = vld [vmem:[%s1164_s1] sm:$0xff]  ;;  %v914_v4 = vmov 0.0|0.0   ;;  %vm915_vm1 = vmmov 0   ;;  %s1113_s6 = scalar_lea.hbm %s1166_s3, %s684_s7 }
  0x3d   : > { %217 = vadd.xlane.f32.xlu0 %v216_v3  ;;  %v294_v11 = vunpack.c.0.s8 %v293_v9  ;;  %v429_v3 = vld [vmem:[%s1164_s1 + $0x8] sm:$0xff]  ;;  %714 = vmatprep.subr.bf16.mxu0 %v914_v4  ;;  %v504_v6 = vld [vmem:[%s1165_s2] sm:$0xff]  ;;  %v506_v9 = vld [vmem:[%s1165_s2 + $0x10] sm:$0xff]  ;;  %vm403_vm2 = vcmask 130112   ;;  %vm430_vm3 = vcmask 130048   ;;  %vm508_vm4 = vcmask 261120  }
  0x3e   : > { %v226_v12 = vsub.s32 0, %v1058_v10  ;;  %v230_v13 = vsub.s32 1, %v1058_v10  ;;  %v234_v14 = vsub.s32 2, %v1058_v10  ;;  %v238_v15 = vsub.s32 3, %v1058_v10  ;;  %717 = vmatprep.subr.bf16.mxu1 %v914_v4  ;;  %700 = vmatprep.mubr.msk.f32.mxu0 %vm915_vm1, %v913_v1  ;;  %s203_s18 = scalar_lea.vmem [#allocation6], %s1049_s11  ;;  %s584_s8 = scalar_lea.sflag [#allocation5], %s1049_s11 }
  0x3f   : > { %v242_v16 = vsub.s32 4, %v1058_v10  ;;  %v246_v17 = vsub.s32 5, %v1058_v10  ;;  %v250_v18 = vsub.s32 6, %v1058_v10  ;;  %v254_v19 = vsub.s32 7, %v1058_v10  ;;  %711 = vmatprep.mubr.msk.f32.mxu1 %vm915_vm1, %v913_v1  ;;  %s596_s19 = sshll.u32 %s203_s18, 4  ;;  %p1174_p9 = scmp.ne.s32.totalorder %s1170_s25, 0  ;;  %s1115_s19 = int_to_ptr.vmem [resolvable:$true] %s596_s19 }
  0x40   : > { %v1069_v21 = vsub.s32 %v294_v11, %v1058_v10  ;;  %v718_v11 = vpack.c.bf16 %v505_v8, %v504_v6  ;;  %s824_s9 = scalar_lea.vmem %s1115_s19, 16  ;;  %s916_s15 = smov [#allocation6]  }
  0x41   : > { %220 = vadd.xlane.f32.xlu0 %v219_v5  ;;  %v715_v5 = vpack.c.bf16 %v429_v3, %v428_v2  ;;  %p825_p8 = scmp.ne.s32.totalorder %s1115_s19, %s824_s9  ;;  %s828_s10 = sshll.u32 %s916_s15, 4  ;;  %s829_s10 = int_to_ptr.vmem [resolvable:$false] %s828_s10 }
  0x42   : > { %719 = vmatpush3.bf16.msra.mxu1 %v718_v11  ;;  %s830_s22 = scalar_lea.vmem %s829_s10, 32  ;;  %p831_p6 = scmp.lt.s32.totalorder %s1115_s19, %s829_s10 }
  0x43   : > { %716 = vmatpush3.bf16.msra.mxu0 %v715_v5  ;;  %720 = vmatprep.subr.bf16.mxu1 %v914_v4  ;;  %p826_p11 = pnand %p825_p8, %p1174_p9  ;;  %p832_p13 = scmp.lt.s32.totalorder %s830_s22, %s824_s9 }
  0x45   : > { %p827_p0 = pneg %p826_p11  ;;  %p833_p2 = por %p832_p13, %p831_p6 }
  0x47   : > { %p834_p5 = pnand %p833_p2, %p827_p0 }
  0xca   : > { %v218_v20 = vpop.xlane.xlu0 %217 }
  0xcb   : > { %v227_v22 = vrot.slane %v218_v20, %v226_v12  ;;  %v231_v23 = vrot.slane %v218_v20, %v230_v13  ;;  %v235_v24 = vrot.slane %v218_v20, %v234_v14  ;;  %v239_v25 = vrot.slane %v218_v20, %v238_v15 }
  0xcc   : > { %v243_v26 = vrot.slane %v218_v20, %v242_v16  ;;  %v247_v27 = vrot.slane %v218_v20, %v246_v17  ;;  %v251_v28 = vrot.slane %v218_v20, %v250_v18  ;;  %v255_v29 = vrot.slane %v218_v20, %v254_v19 }
  0xcd   : > { %v288_v30 = vcombine.low %v227_v22, %v231_v23  ;;  %v289_v31 = vcombine.low %v235_v24, %v239_v25  ;;  %v211_v25 = vld [vmem:[#allocation2] sm:$0x1] }
  0xce   : > { %v221_v32 = vpop.xlane.xlu0 %220  ;;  %v290_v33 = vcombine.low %v243_v26, %v247_v27  ;;  %v291_v34 = vcombine.low %v251_v28, %v255_v29 }
  0xcf   : > { %v298_v35 = vrot.slane %v288_v30, %v1069_v21  ;;  %v305_v36 = vrot.slane %v289_v31, %v1069_v21  ;;  %v259_v37 = vrot.slane %v221_v32, %v226_v12  ;;  %v263_v38 = vrot.slane %v221_v32, %v230_v13  ;;  %v507_v12 = vld [vmem:[%s1165_s2 + $0x18] sm:$0xff] }
  0xd0   : > { %v312_v39 = vrot.slane %v290_v33, %v1069_v21  ;;  %v319_v40 = vrot.slane %v291_v34, %v1069_v21  ;;  %v267_v41 = vrot.slane %v221_v32, %v234_v14  ;;  %v271_v42 = vrot.slane %v221_v32, %v238_v15 }
  0xd1   : > { %v320_v43 = vcombine.low %v298_v35, %v305_v36  ;;  %v275_v44 = vrot.slane %v221_v32, %v242_v16  ;;  %v279_v45 = vrot.slane %v221_v32, %v246_v17  ;;  %v283_v46 = vrot.slane %v221_v32, %v250_v18 }
  0xd2   : > { %v321_v47 = vcombine.low %v312_v39, %v319_v40  ;;  %v287_v48 = vrot.slane %v221_v32, %v254_v19  ;;  %v337_v49 = vcombine.low %v259_v37, %v263_v38  ;;  %v338_v50 = vcombine.low %v267_v41, %v271_v42 }
  0xd3   : > { %v328_v51 = vrot.slane %v320_v43, %v1069_v21  ;;  %v339_v52 = vcombine.low %v275_v44, %v279_v45  ;;  %v721_v13 = vpack.c.bf16 %v507_v12, %v506_v9  ;;  %v393_v14 = vand.u32 127, %v224_v7 }
  0xd4   : > { %v335_v53 = vrot.slane %v321_v47, %v1069_v21  ;;  %v340_v54 = vcombine.low %v283_v46, %v287_v48  ;;  %v347_v55 = vrot.slane %v337_v49, %v1069_v21  ;;  %v354_v56 = vrot.slane %v338_v50, %v1069_v21 }
  0xd5   : > { %v361_v57 = vrot.slane %v339_v52, %v1069_v21  ;;  %722 = vmatpush3.bf16.msra.mxu1 %v721_v13  ;;  %v398_v15 = vadd.s32 4294967288, %v393_v14  ;;  %v396_v17 = vsub.s32 %v393_v14, %v1058_v10 }
  0xd6   : > { %v336_v58 = vcombine.low %v328_v51, %v335_v53  ;;  %v368_v59 = vrot.slane %v340_v54, %v1069_v21  ;;  %v369_v60 = vcombine.low %v347_v55, %v354_v56 }
  0xd7   : > { %v401_v18 = vsub.s32 %v398_v15, %v1058_v10 }
  0xd8   : > { %387 = vperm.xlu1 %792, %v336_v58   ;;  %v370_v61 = vcombine.low %v361_v57, %v368_v59  ;;  %v377_v62 = vrot.slane %v369_v60, %v1069_v21 }
  0xda   : > { %v384_v63 = vrot.slane %v370_v61, %v1069_v21 }
  0xdc   : > { %v385_v0 = vcombine.low %v377_v62, %v384_v63 }
  0xde   : > { %390 = vperm.xlu1 %792, %v385_v0  }
 0x157   : > { %v388_v16 = vpop.permute.xlu1 %387 }
 0x158   : > { %v397_v20 = vrot.slane %v388_v16, %v396_v17 }
 0x15d   : > { %v391_v19 = vpop.permute.xlu1 %390 }
 0x15e   : > { %v402_v22 = vrot.slane %v391_v19, %v401_v18 }
 0x160   : > { %v404_v23 = vsel %vm403_vm2, %v402_v22, %v397_v20 }
 0x161   : > { %v411_v24 = vrot.slane %v404_v23, %v1069_v21 }
 0x163   : > { %v418_v26 = vrot.slane %v411_v24, %v1069_v21 }
 0x165   : > { %v420_v27 = vadd.f32 %v418_v26, %v211_v25 }
 0x167   : > { %422 = vst.msk [vmem:[#allocation2] sm:$0x1] %vm209_vm0, %v420_v27 }
 0x16e   : > { %v426_v7 = vld [vmem:[#allocation2] sm:$0x1] }
 0x16f   : > { %v427_v28 = vmul.f32 0.00390625, %v426_v7 }
 0x171   : > { %701 = vmatmul.mubr.msk.f32.vlgmr.msra.gmra.mrb[0].mxu0 %vm430_vm3, %v427_v28 }
 0x244   : > { %v500_v10 = vpop.f32.mrb[0].mxu0 }
 0x245   : > { %v702_v29 = vpop.f32.mrb[1].mxu0  ;;  %712 = vmatmul.mubr.msk.f32.vlgmr.msra.gmra.mrb[0].mxu1 %vm508_vm4, %v500_v10 }
 0x318   : > { %v578_v21 = vpop.f32.mrb[0].mxu1 }
 0x319   : > { %582 = vst.msk [vmem:[%s203_s18] sm:$0x1] %vm209_vm0, %v578_v21  ;;  %v713_v30 = vpop.f32.mrb[1].mxu1 }
 0x31a   : > { %837 = shalt.err (!%p834_p5)
}
 0x31b   : > { %s838_s11 = scalar_lea.hbm %s1113_s6, 16  ;;  %s842_s29 = scalar_lea.hbm %s1166_s3, 32 }
 0x31c   : > { %p839_p4 = scmp.ne.s32.totalorder %s1113_s6, %s838_s11  ;;  %p843_p12 = scmp.lt.u32.totalorder %s1113_s6, %s1166_s3 }
 0x31d   : > { %p844_p1 = scmp.lt.u32.totalorder %s842_s29, %s838_s11  ;;  %p846_p8 = scmp.lt.u32.totalorder %s838_s11, %s1113_s6 }
 0x31e   : > { %p840_p7 = pnand %p839_p4, %p1174_p9 }
 0x31f   : > { %p845_p3 = por %p844_p1, %p843_p12 }
 0x320   : > { %p841_p10 = pneg %p840_p7 }
 0x321   : > { %p847_p11 = por %p846_p8, %p845_p3 }
 0x323   : > { %p848_p0 = pnand %p847_p11, %p841_p10 }
 0x325   : > { %851 = shalt.err (!%p848_p0)
}
 0x326   : > { %725 = dma.vmem_to_hbm [thread:$0]  (%p1174_p9), %s1115_s19, 16, %s1113_s6, %s584_s8  }
 0x327 PF: > { %s608_s5 = sand.u32 1, %s886_s12   ;;  %p1175_p6 = scmp.ne.s32.totalorder %s1171_s27, 0 }
 0x328   : > { %p1176_p13 = scmp.ge.s32.totalorder %s906_s17, 2  ;;  %s609_s7 = scalar_lea.sflag [#allocation5], %s608_s5 }
 0x32a   : > { %p732_p2 = pnand %p1176_p13, %p1175_p6 }
 0x32c   : > { %881 = dma.done.wait (!%p732_p2), %s609_s7, 16  }
 0x32d   : > { %883 = vsyncadd (!%p732_p2), %s609_s7, 4294967280  ;;  %s19_s17 = sadd.s32 1, %s906_s17   ;;  %s1177_s12 = smov %s890_s13 }
 0x32e   : > { %p16_p5 = scmp.ge.s32.totalorder %s19_s17, 4   ;;  %s1178_s13 = smov %s894_s14 }
 0x32f   : > { %s1179_s14 = smov %s993_s26  ;;  %s1180_s15 = smov %s902_s16 }
 0x330   : > { %s1181_s16 = smov %s1183_s20  ;;  %18 = sbr.rel (!%p16_p5) target bundleno = 6 (0x6), region = 85 }
 0x337   :  { %613 = vsyncpa [#allocation4], 1 }
 0x338   :  { %615 = vsyncpa [#allocation4 + $0x1], 1 }
 0x339   :  { %616 = vsyncpa [#allocation5], 1 }
 0x33a   :  { %618 = vsyncpa [#allocation5 + $0x1], 1 }

// kernel: tpu_custom_call.1
= control target key start
LH: loop header
LB: loop body
LE: loop exit
PB: predicated region body
PF: predicated region fallthrough
CT: control target
= control target key end

     0   :  { %8 = vsyncpa [#allocation4], 0  ;;  %s1163_s0 = inlined_call_operand.hbm [shape: f32[2,1,16,256], index: 0, kind: input, shape index: {}]   ;;  %s1164_s1 = inlined_call_operand.vmem [shape: f32[16,32], index: 1, kind: input, shape index: {}]   ;;  %s1165_s2 = inlined_call_operand.vmem [shape: f32[32,16], index: 2, kind: input, shape index: {}]   ;;  %s1166_s3 = inlined_call_operand.hbm [shape: f32[2,1,16], index: 3, kind: output, shape index: {}]  }
   0x1   :  { %10 = vsyncpa [#allocation4 + $0x1], 0 }
   0x2   :  { %11 = vsyncpa [#allocation5], 0 }
   0x3   :  { %13 = vsyncpa [#allocation5 + $0x1], 0  ;;  %s937_s12 = smov 0   ;;  %s939_s13 = smov 0  }
   0x4   :  { %s941_s14 = smov 0   ;;  %s943_s15 = smov 0  }
   0x5   :  { %s945_s16 = smov 0   ;;  %s947_s17 = smov 0  }
   0x6 LB: > { %s673_s18 = sadd.s32 4294967295, %s906_s17   ;;  %s674_s19 = sadd.s32 4294967294, %s906_s17   ;;  %s906_s17 = sphi %s947_s17, %s19_s17   ;;  %s902_s16 = sphi %s945_s16, %s1181_s16   ;;  %s898_s15 = sphi %s943_s15, %s1180_s15   ;;  %s894_s14 = sphi %s941_s14, %s1179_s14   ;;  %s890_s13 = sphi %s939_s13, %s1178_s13   ;;  %s886_s12 = sphi %s937_s12, %s1177_s12  }
   0x7   : > { %s31_s20 = sadd.s32 1, %s902_s16  ;;  %s40_s21 = sadd.s32 1, %s894_s14 }
   0x8   : > { %p33_p0 = scmp.ge.s32.totalorder %s31_s20, 2  ;;  %p47_p1 = scmp.ne.s32.totalorder %s894_s14, %s890_s13 }
   0x9   : > { %p48_p2 = scmp.eq.s32.totalorder %s906_s17, 0  ;;  %p53_p3 = scmp.ne.s32.totalorder %s890_s13, %s886_s12 }
   0xa   : > { %s1183_s20 = smov (%p33_p0, %s31_s20), 0  ;;  %p54_p5 = scmp.eq.s32.totalorder %s673_s18, 0 }
   0xb   : > { %p978_p4 = por %p48_p2, %p47_p1  ;;  %s35_s23 = ssub.s32 %s902_s16, %s1183_s20 }
   0xc   : > { %p119_p6 = scmp.eq.s32.totalorder %s673_s18, 1  ;;  %p38_p7 = scmp.eq.s32.totalorder %s35_s23, 0 }
   0xd   : > { %p984_p8 = por %p54_p5, %p53_p3  ;;  %p125_p10 = scmp.eq.s32.totalorder %s674_s19, 1 }
   0xe   : > { %p988_p9 = por %p119_p6, %p47_p1  ;;  %p735_p13 = scmp.lt.s32.totalorder %s906_s17, 2 }
   0xf   : > { %s993_s26 = scalar_select %p38_p7, %s894_s14, %s40_s21  }
  0x10   : > { %s1170_s25 = scalar_select %p988_p9, 1, 0 }
  0x11   : > { %p995_p11 = por %p125_p10, %p53_p3  ;;  %s151_s28 = sand.u32 1, %s894_s14  }
  0x12   : > { %s677_s29 = sshll.u32 %s151_s28, 5  ;;  %s687_s30 = sshll.u32 %s902_s16, 9 }
  0x13   : > { %s1171_s27 = scalar_select %p995_p11, 1, 0 }
  0x14   : > { %s1006_s6 = scalar_lea.hbm %s1163_s0, %s687_s30  ;;  %s155_s7 = scalar_lea.vmem [#allocation3], %s677_s29 }
  0x15   : > { %s164_s8 = sshll.u32 %s155_s7, 4  ;;  %p1012_p0 = pnand %p735_p13, %p978_p4  ;;  %s1008_s8 = int_to_ptr.vmem [resolvable:$true] %s164_s8 }
  0x16   : > { %s1017_s10 = scalar_lea.sflag [#allocation4], %s151_s28  ;;  %s794_s11 = scalar_lea.hbm %s1006_s6, 512 }
  0x17   : > { %p795_p2 = scmp.ne.s32.totalorder %s1006_s6, %s794_s11  ;;  %p796_p3 = pneg %p1012_p0 }
  0x18   : > { %s799_s21 = scalar_lea.hbm %s1163_s0, 1024  ;;  %p800_p4 = scmp.lt.u32.totalorder %s1006_s6, %s1163_s0 }
  0x19   : > { %p797_p5 = pnand %p796_p3, %p795_p2  ;;  %p801_p7 = scmp.lt.u32.totalorder %s799_s21, %s794_s11 }
  0x1a   : > { %p803_p13 = scmp.lt.u32.totalorder %s794_s11, %s1006_s6 }
  0x1b   : > { %p798_p6 = pneg %p797_p5  ;;  %p802_p10 = por %p801_p7, %p800_p4 }
  0x1d   : > { %p804_p12 = por %p803_p13, %p802_p10 }
  0x1f   : > { %p805_p1 = pnand %p804_p12, %p798_p6 }
  0x21   : > { %808 = shalt.err (!%p805_p1)
}
  0x22   : > { %s809_s28 = scalar_lea.vmem %s1008_s8, 512  ;;  %s908_s29 = smov [#allocation3]  }
  0x23   : > { %p810_p2 = scmp.ne.s32.totalorder %s1008_s8, %s809_s28  ;;  %s814_s30 = sshll.u32 %s908_s29, 4  ;;  %s815_s30 = int_to_ptr.vmem [resolvable:$false] %s814_s30 }
  0x24   : > { %s816_s4 = scalar_lea.vmem %s815_s30, 1024  ;;  %p817_p9 = scmp.lt.s32.totalorder %s1008_s8, %s815_s30 }
  0x25   : > { %p812_p5 = pnand %p810_p2, %p796_p3  ;;  %p818_p4 = scmp.lt.s32.totalorder %s816_s4, %s809_s28 }
  0x27   : > { %p813_p11 = pneg %p812_p5  ;;  %p819_p7 = por %p818_p4, %p817_p9 }
  0x29   : > { %p820_p10 = pnand %p819_p7, %p813_p11 }
  0x2b   : > { %823 = shalt.err (!%p820_p10)
}
  0x2c   : > { %s909_s5 = smov 256   ;;  %s910_s7 = smov 16  }
  0x2d   : > { %730 = dma.hbm_to_vmem [thread:$0]  (!%p1012_p0), %s1006_s6, 512, %s1008_s8, %s1017_s10, %s909_s5, %s909_s5, %s910_s7  }
  0x2e   : > { %p172_p12 = scmp.lt.s32.totalorder %s906_s17, 3  ;;  %p1173_p1 = scmp.ge.s32.totalorder %s906_s17, 1 }
  0x30   : > { %p173_p3 = pnand %p1173_p1, %p172_p12 }
  0x31   : > { %s1049_s11 = sand.u32 (!%p173_p3), 1, %s890_s13  }
  0x32   : > { %176 = sbr.rel (%p173_p3) target bundleno = 807 (0x327), region = 32  ;;  %s681_s18 = sshll.u32 (!%p173_p3), %s1049_s11, 5 }
  0x33   : > { %s179_s19 = scalar_lea.sflag (!%p173_p3), [#allocation4], %s1049_s11  ;;  %s182_s21 = scalar_lea.vmem (!%p173_p3), [#allocation3], %s681_s18 }
  0x39   : > { %877 = dma.done.wait (%p984_p8), %s179_s19, 512  }
  0x3a   : > { %879 = vsyncadd (%p984_p8), %s179_s19, 4294966784  ;;  %v212_v0 = vld [vmem:[%s182_s21] sm:$0xff]  ;;  %v213_v1 = vld [vmem:[%s182_s21 + $0x8] sm:$0xff]  ;;  %v911_v6 = vmov 0   ;;  %v224_v7 = vlaneseq  ;;  %v912_v8 = vmov 1966171168  }
  0x3b   : > { %v214_v2 = vld [vmem:[%s182_s21 + $0x10] sm:$0xff]  ;;  %v216_v3 = vadd.f32 %v213_v1, %v212_v0  ;;  %v215_v4 = vld [vmem:[%s182_s21 + $0x18] sm:$0xff]  ;;  %792 = vset.pattern.permute.xlu1 %v911_v6  ;;  %793 = vset.pattern.permute.xlu0 %v911_v6  ;;  %v293_v9 = vunpack.c.l.s4 %v912_v8  ;;  %vm209_vm0 = vcmask 122880   ;;  %v913_v1 = vmov 0.0   ;;  %v505_v8 = vld [vmem:[%s1165_s2 + $0x8] sm:$0xff]  ;;  %s684_s7 = sshll.u32 %s898_s15, 4 }
  0x3c   : > { %v219_v5 = vadd.f32 %v215_v4, %v214_v2  ;;  %v1058_v10 = vshrl.u32 %v224_v7, 7  ;;  %210 = vst.msk [vmem:[#allocation2] sm:$0x1] %vm209_vm0, %v913_v1  ;;  %v428_v2 = vld [vmem:[%s1164_s1] sm:$0xff]  ;;  %v914_v4 = vmov 0.0|0.0   ;;  %vm915_vm1 = vmmov 0   ;;  %s1113_s6 = scalar_lea.hbm %s1166_s3, %s684_s7 }
  0x3d   : > { %217 = vadd.xlane.f32.xlu0 %v216_v3  ;;  %v294_v11 = vunpack.c.0.s8 %v293_v9  ;;  %v429_v3 = vld [vmem:[%s1164_s1 + $0x8] sm:$0xff]  ;;  %714 = vmatprep.subr.bf16.mxu0 %v914_v4  ;;  %v504_v6 = vld [vmem:[%s1165_s2] sm:$0xff]  ;;  %v506_v9 = vld [vmem:[%s1165_s2 + $0x10] sm:$0xff]  ;;  %vm403_vm2 = vcmask 130112   ;;  %vm430_vm3 = vcmask 130048   ;;  %vm508_vm4 = vcmask 261120  }
  0x3e   : > { %v226_v12 = vsub.s32 0, %v1058_v10  ;;  %v230_v13 = vsub.s32 1, %v1058_v10  ;;  %v234_v14 = vsub.s32 2, %v1058_v10  ;;  %v238_v15 = vsub.s32 3, %v1058_v10  ;;  %717 = vmatprep.subr.bf16.mxu1 %v914_v4  ;;  %700 = vmatprep.mubr.msk.f32.mxu0 %vm915_vm1, %v913_v1  ;;  %s203_s18 = scalar_lea.vmem [#allocation6], %s1049_s11  ;;  %s584_s8 = scalar_lea.sflag [#allocation5], %s1049_s11 }
  0x3f   : > { %v242_v16 = vsub.s32 4, %v1058_v10  ;;  %v246_v17 = vsub.s32 5, %v1058_v10  ;;  %v250_v18 = vsub.s32 6, %v1058_v10  ;;  %v254_v19 = vsub.s32 7, %v1058_v10  ;;  %711 = vmatprep.mubr.msk.f32.mxu1 %vm915_vm1, %v913_v1  ;;  %s596_s19 = sshll.u32 %s203_s18, 4  ;;  %p1174_p9 = scmp.ne.s32.totalorder %s1170_s25, 0  ;;  %s1115_s19 = int_to_ptr.vmem [resolvable:$true] %s596_s19 }
  0x40   : > { %v1069_v21 = vsub.s32 %v294_v11, %v1058_v10  ;;  %v718_v11 = vpack.c.bf16 %v505_v8, %v504_v6  ;;  %s824_s9 = scalar_lea.vmem %s1115_s19, 16  ;;  %s916_s15 = smov [#allocation6]  }
  0x41   : > { %220 = vadd.xlane.f32.xlu0 %v219_v5  ;;  %v715_v5 = vpack.c.bf16 %v429_v3, %v428_v2  ;;  %p825_p8 = scmp.ne.s32.totalorder %s1115_s19, %s824_s9  ;;  %s828_s10 = sshll.u32 %s916_s15, 4  ;;  %s829_s10 = int_to_ptr.vmem [resolvable:$false] %s828_s10 }
  0x42   : > { %719 = vmatpush3.bf16.msra.mxu1 %v718_v11  ;;  %s830_s22 = scalar_lea.vmem %s829_s10, 32  ;;  %p831_p6 = scmp.lt.s32.totalorder %s1115_s19, %s829_s10 }
  0x43   : > { %716 = vmatpush3.bf16.msra.mxu0 %v715_v5  ;;  %720 = vmatprep.subr.bf16.mxu1 %v914_v4  ;;  %p826_p11 = pnand %p825_p8, %p1174_p9  ;;  %p832_p13 = scmp.lt.s32.totalorder %s830_s22, %s824_s9 }
  0x45   : > { %p827_p0 = pneg %p826_p11  ;;  %p833_p2 = por %p832_p13, %p831_p6 }
  0x47   : > { %p834_p5 = pnand %p833_p2, %p827_p0 }
  0xca   : > { %v218_v20 = vpop.xlane.xlu0 %217 }
  0xcb   : > { %v227_v22 = vrot.slane %v218_v20, %v226_v12  ;;  %v231_v23 = vrot.slane %v218_v20, %v230_v13  ;;  %v235_v24 = vrot.slane %v218_v20, %v234_v14  ;;  %v239_v25 = vrot.slane %v218_v20, %v238_v15 }
  0xcc   : > { %v243_v26 = vrot.slane %v218_v20, %v242_v16  ;;  %v247_v27 = vrot.slane %v218_v20, %v246_v17  ;;  %v251_v28 = vrot.slane %v218_v20, %v250_v18  ;;  %v255_v29 = vrot.slane %v218_v20, %v254_v19 }
  0xcd   : > { %v288_v30 = vcombine.low %v227_v22, %v231_v23  ;;  %v289_v31 = vcombine.low %v235_v24, %v239_v25  ;;  %v211_v25 = vld [vmem:[#allocation2] sm:$0x1] }
  0xce   : > { %v221_v32 = vpop.xlane.xlu0 %220  ;;  %v290_v33 = vcombine.low %v243_v26, %v247_v27  ;;  %v291_v34 = vcombine.low %v251_v28, %v255_v29 }
  0xcf   : > { %v298_v35 = vrot.slane %v288_v30, %v1069_v21  ;;  %v305_v36 = vrot.slane %v289_v31, %v1069_v21  ;;  %v259_v37 = vrot.slane %v221_v32, %v226_v12  ;;  %v263_v38 = vrot.slane %v221_v32, %v230_v13  ;;  %v507_v12 = vld [vmem:[%s1165_s2 + $0x18] sm:$0xff] }
  0xd0   : > { %v312_v39 = vrot.slane %v290_v33, %v1069_v21  ;;  %v319_v40 = vrot.slane %v291_v34, %v1069_v21  ;;  %v267_v41 = vrot.slane %v221_v32, %v234_v14  ;;  %v271_v42 = vrot.slane %v221_v32, %v238_v15 }
  0xd1   : > { %v320_v43 = vcombine.low %v298_v35, %v305_v36  ;;  %v275_v44 = vrot.slane %v221_v32, %v242_v16  ;;  %v279_v45 = vrot.slane %v221_v32, %v246_v17  ;;  %v283_v46 = vrot.slane %v221_v32, %v250_v18 }
  0xd2   : > { %v321_v47 = vcombine.low %v312_v39, %v319_v40  ;;  %v287_v48 = vrot.slane %v221_v32, %v254_v19  ;;  %v337_v49 = vcombine.low %v259_v37, %v263_v38  ;;  %v338_v50 = vcombine.low %v267_v41, %v271_v42 }
  0xd3   : > { %v328_v51 = vrot.slane %v320_v43, %v1069_v21  ;;  %v339_v52 = vcombine.low %v275_v44, %v279_v45  ;;  %v721_v13 = vpack.c.bf16 %v507_v12, %v506_v9  ;;  %v393_v14 = vand.u32 127, %v224_v7 }
  0xd4   : > { %v335_v53 = vrot.slane %v321_v47, %v1069_v21  ;;  %v340_v54 = vcombine.low %v283_v46, %v287_v48  ;;  %v347_v55 = vrot.slane %v337_v49, %v1069_v21  ;;  %v354_v56 = vrot.slane %v338_v50, %v1069_v21 }
  0xd5   : > { %v361_v57 = vrot.slane %v339_v52, %v1069_v21  ;;  %722 = vmatpush3.bf16.msra.mxu1 %v721_v13  ;;  %v398_v15 = vadd.s32 4294967288, %v393_v14  ;;  %v396_v17 = vsub.s32 %v393_v14, %v1058_v10 }
  0xd6   : > { %v336_v58 = vcombine.low %v328_v51, %v335_v53  ;;  %v368_v59 = vrot.slane %v340_v54, %v1069_v21  ;;  %v369_v60 = vcombine.low %v347_v55, %v354_v56 }
  0xd7   : > { %v401_v18 = vsub.s32 %v398_v15, %v1058_v10 }
  0xd8   : > { %387 = vperm.xlu1 %792, %v336_v58   ;;  %v370_v61 = vcombine.low %v361_v57, %v368_v59  ;;  %v377_v62 = vrot.slane %v369_v60, %v1069_v21 }
  0xda   : > { %v384_v63 = vrot.slane %v370_v61, %v1069_v21 }
  0xdc   : > { %v385_v0 = vcombine.low %v377_v62, %v384_v63 }
  0xde   : > { %390 = vperm.xlu1 %792, %v385_v0  }
 0x157   : > { %v388_v16 = vpop.permute.xlu1 %387 }
 0x158   : > { %v397_v20 = vrot.slane %v388_v16, %v396_v17 }
 0x15d   : > { %v391_v19 = vpop.permute.xlu1 %390 }
 0x15e   : > { %v402_v22 = vrot.slane %v391_v19, %v401_v18 }
 0x160   : > { %v404_v23 = vsel %vm403_vm2, %v402_v22, %v397_v20 }
 0x161   : > { %v411_v24 = vrot.slane %v404_v23, %v1069_v21 }
 0x163   : > { %v418_v26 = vrot.slane %v411_v24, %v1069_v21 }
 0x165   : > { %v420_v27 = vadd.f32 %v418_v26, %v211_v25 }
 0x167   : > { %422 = vst.msk [vmem:[#allocation2] sm:$0x1] %vm209_vm0, %v420_v27 }
 0x16e   : > { %v426_v7 = vld [vmem:[#allocation2] sm:$0x1] }
 0x16f   : > { %v427_v28 = vmul.f32 0.00390625, %v426_v7 }
 0x171   : > { %701 = vmatmul.mubr.msk.f32.vlgmr.msra.gmra.mrb[0].mxu0 %vm430_vm3, %v427_v28 }
 0x244   : > { %v500_v10 = vpop.f32.mrb[0].mxu0 }
 0x245   : > { %v702_v29 = vpop.f32.mrb[1].mxu0  ;;  %712 = vmatmul.mubr.msk.f32.vlgmr.msra.gmra.mrb[0].mxu1 %vm508_vm4, %v500_v10 }
 0x318   : > { %v578_v21 = vpop.f32.mrb[0].mxu1 }
 0x319   : > { %582 = vst.msk [vmem:[%s203_s18] sm:$0x1] %vm209_vm0, %v578_v21  ;;  %v713_v30 = vpop.f32.mrb[1].mxu1 }
 0x31a   : > { %837 = shalt.err (!%p834_p5)
}
 0x31b   : > { %s838_s11 = scalar_lea.hbm %s1113_s6, 16  ;;  %s842_s29 = scalar_lea.hbm %s1166_s3, 32 }
 0x31c   : > { %p839_p4 = scmp.ne.s32.totalorder %s1113_s6, %s838_s11  ;;  %p843_p12 = scmp.lt.u32.totalorder %s1113_s6, %s1166_s3 }
 0x31d   : > { %p844_p1 = scmp.lt.u32.totalorder %s842_s29, %s838_s11  ;;  %p846_p8 = scmp.lt.u32.totalorder %s838_s11, %s1113_s6 }
 0x31e   : > { %p840_p7 = pnand %p839_p4, %p1174_p9 }
 0x31f   : > { %p845_p3 = por %p844_p1, %p843_p12 }
 0x320   : > { %p841_p10 = pneg %p840_p7 }
 0x321   : > { %p847_p11 = por %p846_p8, %p845_p3 }
 0x323   : > { %p848_p0 = pnand %p847_p11, %p841_p10 }
 0x325   : > { %851 = shalt.err (!%p848_p0)
}
 0x326   : > { %725 = dma.vmem_to_hbm [thread:$0]  (%p1174_p9), %s1115_s19, 16, %s1113_s6, %s584_s8  }
 0x327 PF: > { %s608_s5 = sand.u32 1, %s886_s12   ;;  %p1175_p6 = scmp.ne.s32.totalorder %s1171_s27, 0 }
 0x328   : > { %p1176_p13 = scmp.ge.s32.totalorder %s906_s17, 2  ;;  %s609_s7 = scalar_lea.sflag [#allocation5], %s608_s5 }
 0x32a   : > { %p732_p2 = pnand %p1176_p13, %p1175_p6 }
 0x32c   : > { %881 = dma.done.wait (!%p732_p2), %s609_s7, 16  }
 0x32d   : > { %883 = vsyncadd (!%p732_p2), %s609_s7, 4294967280  ;;  %s19_s17 = sadd.s32 1, %s906_s17   ;;  %s1177_s12 = smov %s890_s13 }
 0x32e   : > { %p16_p5 = scmp.ge.s32.totalorder %s19_s17, 4   ;;  %s1178_s13 = smov %s894_s14 }
 0x32f   : > { %s1179_s14 = smov %s993_s26  ;;  %s1180_s15 = smov %s902_s16 }
 0x330   : > { %s1181_s16 = smov %s1183_s20  ;;  %18 = sbr.rel (!%p16_p5) target bundleno = 6 (0x6), region = 85 }
 0x337   :  { %613 = vsyncpa [#allocation4], 1 }
 0x338   :  { %615 = vsyncpa [#allocation4 + $0x1], 1 }
 0x339   :  { %616 = vsyncpa [#allocation5], 1 }
 0x33a   :  { %618 = vsyncpa [#allocation5 + $0x1], 1 }

</bundles_post_ra>
